<compile_context>
chip_gen: v6e
topology: v6e:2x2x1
jax: 0.10.0
libtpu: 0.0.40
codegen_flags: <defaults>
</compile_context>

<pallas_src>
import jax
import jax.numpy as jnp
from jax.experimental import pallas as pl
from jax.experimental.pallas import tpu as pltpu

EPS = 1e-5          # nn.LayerNorm default
PACK = 4            # patch rows packed per kernel row (PACK*E lanes per store)


def _round_up(x, m):
    return (x + m - 1) // m * m


def _pick_tile(m_packed, cap=1024):
    """Packed-row tile: multiple of 16, <= cap, preferring >= 2 grid steps."""
    if m_packed <= 16:
        return 16
    half = _round_up((m_packed + 1) // 2, 16)
    return min(cap, half)


def _patch_embed_kernel(xp_ref, w_ref, mm_ref, p_ref, o_ref):
    # xp_ref: (tm, PACK*K)      bf16 -- PACK consecutive patch vectors per row
    # w_ref : (PACK*K, PACK*E)  bf16 block-diagonal projection weight
    # mm_ref: (PACK*E, PACK*E)  f32 block-diagonal (1/E) averaging matrix
    # p_ref : (3, PACK*E)       f32 -- rows = conv bias, LN gamma, LN beta (tiled)
    # o_ref : (tm, PACK*E)      f32 packed output
    y = jnp.dot(xp_ref[...], w_ref[...], preferred_element_type=jnp.float32)
    y = y + p_ref[0:1, :]
    # Per-patch LayerNorm statistics via MXU segment-mean (one pass, f32).
    mean = jnp.dot(y, mm_ref[...], preferred_element_type=jnp.float32)
    mean_sq = jnp.dot(y * y, mm_ref[...], preferred_element_type=jnp.float32)
    var = mean_sq - mean * mean                      # biased var (PyTorch LN)
    y = (y - mean) * jax.lax.rsqrt(var + EPS)
    o_ref[...] = (y * p_ref[1:2, :] + p_ref[2:3, :]).astype(o_ref.dtype)


def patch_embed_pallas(xp_packed, w_packed, mean_mat, params, *, tm):
    mp, k4 = xp_packed.shape
    e4 = w_packed.shape[1]
    grid = mp // tm
    cost = pl.CostEstimate(
        flops=2 * mp * k4 * e4 + 2 * 2 * mp * e4 * e4,
        transcendentals=mp * PACK,
        bytes_accessed=(xp_packed.size * 2 + w_packed.size * 2
                        + mean_mat.size * 4 + params.size * 4 + mp * e4 * 4),
    )
    return pl.pallas_call(
        _patch_embed_kernel,
        out_shape=jax.ShapeDtypeStruct((mp, e4), jnp.float32),
        grid_spec=pltpu.PrefetchScalarGridSpec(
            num_scalar_prefetch=0,
            grid=(grid,),
            in_specs=[
                pl.BlockSpec((tm, k4), lambda i: (i, 0)),
                pl.BlockSpec((k4, e4), lambda i: (0, 0)),
                pl.BlockSpec((e4, e4), lambda i: (0, 0)),
                pl.BlockSpec((3, e4), lambda i: (0, 0)),
            ],
            out_specs=pl.BlockSpec((tm, e4), lambda i: (i, 0)),
        ),
        compiler_params=pltpu.CompilerParams(
            dimension_semantics=("parallel",),
            vmem_limit_bytes=32 * 1024 * 1024,
        ),
        cost_estimate=cost,
    )(xp_packed, w_packed, mean_mat, params)


def patch_embedding_forward(x_nchw, conv_w, conv_b, ln_gamma, ln_beta):
    """x [B, C, H, W] -> [B, (H//4)*(W//4), E]  (Conv2d(k=4,s=4) + LayerNorm)."""
    B, C, H, W = x_nchw.shape
    E = conv_w.shape[0]
    ph, pw = H // 4, W // 4
    M, K = B * ph * pw, C * 16
    K4, E4 = PACK * K, PACK * E

    # im2col glue (XLA); (c, kh, kw) element order matches Conv2d's [E,C,4,4].
    # Cast to bf16 first so the transpose pass moves half the bytes.
    # TODO(synk): fusing this rearrangement into the kernel needs an in-kernel
    # lane->sublane relayout (strided ref reads + reshape) with fragile Mosaic
    # lowering; kept in XLA for robustness.
    xp = x_nchw.astype(jnp.bfloat16).reshape(B, C, ph, 4, pw, 4)
    xp = jnp.transpose(xp, (0, 2, 4, 1, 3, 5)).reshape(M, K)

    # Tile choice + PACK-row packing (free reshape; pad remainder with zeros).
    m_packed = (M + PACK - 1) // PACK
    tm = _pick_tile(m_packed)
    mp = _round_up(m_packed, tm)
    pad_rows = mp * PACK - M
    if pad_rows:
        xp = jnp.pad(xp, ((0, pad_rows), (0, 0)))
    xp_packed = xp.reshape(mp, K4)

    # Block-diagonal packed projection weight, LN averaging matrix, merged params.
    w2 = conv_w.reshape(E, K).T.astype(jnp.float32)                    # (K, E)
    w_packed = jnp.kron(jnp.eye(PACK, dtype=jnp.float32), w2).astype(jnp.bfloat16)
    mean_mat = jnp.kron(jnp.eye(PACK, dtype=jnp.float32),
                        jnp.full((E, E), 1.0 / E, dtype=jnp.float32))
    params = jnp.stack([jnp.tile(conv_b.astype(jnp.float32), PACK),
                        jnp.tile(ln_gamma.astype(jnp.float32), PACK),
                        jnp.tile(ln_beta.astype(jnp.float32), PACK)])

    out_packed = patch_embed_pallas(xp_packed, w_packed, mean_mat, params, tm=tm)
    out = out_packed.reshape(mp * PACK, E)          # free reshape (same layout)
    if pad_rows:
        out = out[:M]
    return out.reshape(B, ph * pw, E)


if __name__ == "__main__":
    key = jax.random.PRNGKey(0)
    B, C, H, W = 2, 4, 32, 32   # -> M=128 patches, 2-step parallel grid
    E = 32                      # embed_dim

    k1, k2, k3 = jax.random.split(key, 3)
    x = jax.random.normal(k1, (B, C, H, W), dtype=jnp.float32)
    conv_w = 0.1 * jax.random.normal(k2, (E, C, 4, 4), dtype=jnp.float32)
    conv_b = 0.01 * jax.random.normal(k3, (E,), dtype=jnp.float32)
    ln_gamma = jnp.ones((E,), dtype=jnp.float32)    # nn.LayerNorm default init
    ln_beta = jnp.zeros((E,), dtype=jnp.float32)

    out = patch_embedding_forward(x, conv_w, conv_b, ln_gamma, ln_beta)
    out = jax.block_until_ready(out)

    # Reference in plain JAX with the same bf16 input rounding / f32 accumulate.
    ph, pw = H // 4, W // 4
    xp = x.reshape(B, C, ph, 4, pw, 4)
    xp = jnp.transpose(xp, (0, 2, 4, 1, 3, 5)).reshape(B * ph * pw, C * 16)
    w2 = conv_w.reshape(E, C * 16).T
    y_ref = jnp.dot(xp.astype(jnp.bfloat16), w2.astype(jnp.bfloat16),
                    preferred_element_type=jnp.float32) + conv_b
    mu = y_ref.mean(-1, keepdims=True)
    var = ((y_ref - mu) ** 2).mean(-1, keepdims=True)
    y_ref = (y_ref - mu) / jnp.sqrt(var + EPS) * ln_gamma + ln_beta
    y_ref = y_ref.reshape(B, ph * pw, E)

    assert out.shape == (B, ph * pw, E)
    # bf16 MXU inputs (both paths) + MXU-based LN stats -> modest tolerance.
    assert jnp.allclose(out, y_ref, atol=5e-3, rtol=5e-3), float(
        jnp.max(jnp.abs(out - y_ref)))
    print("KERNEL_OK")
</pallas_src>

<mosaic_0001>
module attributes {stable_mosaic.version = 11 : i64} {
  func.func @_patch_embed_kernel(%arg0: i32, %arg1: memref<16x256xbf16, #tpu.memory_space<vmem>>, %arg2: memref<256x128xbf16, #tpu.memory_space<vmem>>, %arg3: memref<128x128xf32, #tpu.memory_space<vmem>>, %arg4: memref<3x128xf32, #tpu.memory_space<vmem>>, %arg5: memref<16x128xf32, #tpu.memory_space<vmem>>) attributes {dimension_semantics = [#tpu.dimension_semantics<parallel>], iteration_bounds = array<i64: 2>, scalar_prefetch = 0 : i64, scratch_operands = 0 : i64, tpu.core_type = #tpu.core_type<tc>, window_params = [{transform_indices = @transform_0, window_bounds = array<i64: 16, 256>}, {pipeline_mode = #tpu.pipeline_mode<synchronous>, transform_indices = @transform_1, window_bounds = array<i64: 256, 128>}, {pipeline_mode = #tpu.pipeline_mode<synchronous>, transform_indices = @transform_2, window_bounds = array<i64: 128, 128>}, {pipeline_mode = #tpu.pipeline_mode<synchronous>, transform_indices = @transform_3, window_bounds = array<i64: 3, 128>}, {transform_indices = @transform_4, window_bounds = array<i64: 16, 128>}]} {
    %c0 = arith.constant 0 : index
    %c0_0 = arith.constant 0 : index
    %0 = vector.load %arg1[%c0, %c0_0] : memref<16x256xbf16, #tpu.memory_space<vmem>>, vector<16x256xbf16>
    %c0_1 = arith.constant 0 : index
    %c0_2 = arith.constant 0 : index
    %1 = vector.load %arg2[%c0_1, %c0_2] : memref<256x128xbf16, #tpu.memory_space<vmem>>, vector<256x128xbf16>
    %cst = arith.constant dense<0.000000e+00> : vector<16x128xf32>
    %2 = tpu.matmul %0, %1, %cst {dimension_numbers = #tpu.dot_dimension_numbers<[1], [0], [0], [1], [0, 0, 1, 1], [], []>} : vector<16x256xbf16>, vector<256x128xbf16>, vector<16x128xf32> -> vector<16x128xf32>
    %c0_3 = arith.constant 0 : index
    %c0_4 = arith.constant 0 : index
    %3 = vector.load %arg4[%c0_3, %c0_4] : memref<3x128xf32, #tpu.memory_space<vmem>>, vector<1x128xf32>
    %4 = vector.broadcast %3 : vector<1x128xf32> to vector<16x128xf32>
    %5 = arith.addf %2, %4 : vector<16x128xf32>
    %c0_5 = arith.constant 0 : index
    %c0_6 = arith.constant 0 : index
    %6 = vector.load %arg3[%c0_5, %c0_6] : memref<128x128xf32, #tpu.memory_space<vmem>>, vector<128x128xf32>
    %cst_7 = arith.constant dense<0.000000e+00> : vector<16x128xf32>
    %7 = tpu.matmul %5, %6, %cst_7 {dimension_numbers = #tpu.dot_dimension_numbers<[1], [0], [0], [1], [0, 0, 1, 1], [], []>} : vector<16x128xf32>, vector<128x128xf32>, vector<16x128xf32> -> vector<16x128xf32>
    %8 = arith.mulf %5, %5 : vector<16x128xf32>
    %c0_8 = arith.constant 0 : index
    %c0_9 = arith.constant 0 : index
    %9 = vector.load %arg3[%c0_8, %c0_9] : memref<128x128xf32, #tpu.memory_space<vmem>>, vector<128x128xf32>
    %cst_10 = arith.constant dense<0.000000e+00> : vector<16x128xf32>
    %10 = tpu.matmul %8, %9, %cst_10 {dimension_numbers = #tpu.dot_dimension_numbers<[1], [0], [0], [1], [0, 0, 1, 1], [], []>} : vector<16x128xf32>, vector<128x128xf32>, vector<16x128xf32> -> vector<16x128xf32>
    %11 = arith.mulf %7, %7 : vector<16x128xf32>
    %12 = arith.subf %10, %11 : vector<16x128xf32>
    %13 = arith.subf %5, %7 : vector<16x128xf32>
    %cst_11 = arith.constant 9.99999974E-6 : f32
    %14 = vector.broadcast %cst_11 : f32 to vector<16x128xf32>
    %15 = arith.addf %12, %14 : vector<16x128xf32>
    %16 = math.rsqrt %15 : vector<16x128xf32>
    %17 = arith.mulf %13, %16 : vector<16x128xf32>
    %c1 = arith.constant 1 : index
    %c0_12 = arith.constant 0 : index
    %18 = vector.load %arg4[%c1, %c0_12] : memref<3x128xf32, #tpu.memory_space<vmem>>, vector<1x128xf32>
    %19 = vector.broadcast %18 : vector<1x128xf32> to vector<16x128xf32>
    %20 = arith.mulf %17, %19 : vector<16x128xf32>
    %c2 = arith.constant 2 : index
    %c0_13 = arith.constant 0 : index
    %21 = vector.load %arg4[%c2, %c0_13] : memref<3x128xf32, #tpu.memory_space<vmem>>, vector<1x128xf32>
    %22 = vector.broadcast %21 : vector<1x128xf32> to vector<16x128xf32>
    %23 = arith.addf %20, %22 : vector<16x128xf32>
    %c0_14 = arith.constant 0 : index
    %c0_15 = arith.constant 0 : index
    %24 = vector.load %arg5[%c0_14, %c0_15] : memref<16x128xf32, #tpu.memory_space<vmem>>, vector<16x128xf32>
    tpu.vector_store %arg5[%c0_14, %c0_15], %23 {strides = array<i32>} : memref<16x128xf32, #tpu.memory_space<vmem>>, vector<16x128xf32>,
    return
  }
  func.func @transform_0(%arg0: i32) -> (i32, i32) {
    %c0_i32 = arith.constant 0 : i32
    %c0_i32_0 = arith.constant 0 : i32
    return %arg0, %c0_i32 : i32, i32
  }
  func.func @transform_1(%arg0: i32) -> (i32, i32) {
    %c0_i32 = arith.constant 0 : i32
    %c0_i32_0 = arith.constant 0 : i32
    %c0_i32_1 = arith.constant 0 : i32
    return %c0_i32, %c0_i32_0 : i32, i32
  }
  func.func @transform_2(%arg0: i32) -> (i32, i32) {
    %c0_i32 = arith.constant 0 : i32
    %c0_i32_0 = arith.constant 0 : i32
    %c0_i32_1 = arith.constant 0 : i32
    return %c0_i32, %c0_i32_0 : i32, i32
  }
  func.func @transform_3(%arg0: i32) -> (i32, i32) {
    %c0_i32 = arith.constant 0 : i32
    %c0_i32_0 = arith.constant 0 : i32
    %c0_i32_1 = arith.constant 0 : i32
    return %c0_i32, %c0_i32_0 : i32, i32
  }
  func.func @transform_4(%arg0: i32) -> (i32, i32) {
    %c0_i32 = arith.constant 0 : i32
    %c0_i32_0 = arith.constant 0 : i32
    return %arg0, %c0_i32 : i32, i32
  }
}

</mosaic_0001>

<bundles_post_ra>
// kernel: tpu_custom_call.1
= control target key start
LH: loop header
LB: loop body
LE: loop exit
PB: predicated region body
PF: predicated region fallthrough
CT: control target
= control target key end

     0   :  { %9 = vsyncpa [#allocation3], 0  ;;  %s1400_s0 = inlined_call_operand.hbm [shape: bf16[32,256], index: 0, kind: input, shape index: {}]   ;;  %s1401_s1 = inlined_call_operand.hbm [shape: bf16[256,128], index: 1, kind: input, shape index: {}]   ;;  %s1402_s2 = inlined_call_operand.hbm [shape: f32[128,128], index: 2, kind: input, shape index: {}]   ;;  %s1403_s3 = inlined_call_operand.vmem [shape: f32[3,128], index: 3, kind: input, shape index: {}]   ;;  %s1404_s4 = inlined_call_operand.hbm [shape: f32[32,128], index: 4, kind: output, shape index: {}]  }
   0x1   :  { %11 = vsyncpa [#allocation3 + $0x1], 0 }
   0x2   :  { %12 = vsyncpa [#allocation6], 0 }
   0x3   :  { %13 = vsyncpa [#allocation4], 0 }
   0x4   :  { %15 = vsyncpa [#allocation4 + $0x1], 0  ;;  %s1189_s15 = smov 0   ;;  %s1191_s16 = smov 0  }
   0x5   :  { %s1193_s17 = smov 0   ;;  %s1195_s18 = smov 0  }
   0x6 LB: > { %s1210_s19 = sadd.s32 4294967295, %s1152_s18   ;;  %s737_s20 = sadd.s32 4294967294, %s1152_s18   ;;  %s1152_s18 = sphi %s1195_s18, %s1426_s18   ;;  %s1148_s17 = sphi %s1193_s17, %s1425_s17   ;;  %s1144_s16 = sphi %s1191_s16, %s1424_s16   ;;  %s1140_s15 = sphi %s1189_s15, %s1423_s15  }
   0x7   : > { %p41_p0 = scmp.ne.s32.totalorder %s1144_s16, %s1140_s15  ;;  %p1405_p1 = scmp.eq.s32.totalorder %s1210_s19, 0 }
   0x8   : > { %p134_p3 = scmp.eq.s32.totalorder %s737_s20, 1  ;;  %p738_p5 = scmp.ge.s32.totalorder %s1152_s18, 1 }
   0x9   : > { %p1219_p4 = por %p1405_p1, %p41_p0  ;;  %p141_p7 = scmp.lt.s32.totalorder %s1152_s18, 3 }
   0xa   : > { %p1224_p6 = por %p134_p3, %p41_p0  ;;  %s1154_s24 = smov [#allocation5]  }
   0xb   : > { %s1409_s21 = scalar_select %p1219_p4, 1, 0 }
   0xc   : > { %s1410_s22 = scalar_select %p1224_p6, 1, 0 }
   0xd   : > { %p1229_p8 = pnand %p738_p5, %p141_p7  ;;  %s153_s25 = sshll.u32 %s1154_s24, 4  ;;  %s154_s25 = int_to_ptr.vmem [resolvable:$true] %s153_s25 }
   0xe   : > { %s1155_s27 = smov [#allocation7]   ;;  %s1015_s29 = scalar_lea.vmem %s154_s25, 2048 }
   0xf   : > { %s1411_s23 = scalar_select %p1229_p8, 1, 0 }
  0x10   : > { %p920_p9 = pneg %p1229_p8  ;;  %s166_s28 = sshll.u32 %s1155_s27, 4  ;;  %s167_s28 = int_to_ptr.vmem [resolvable:$true] %s166_s28 }
  0x11   : > { %p1016_p13 = scmp.ne.s32.totalorder %s154_s25, %s1015_s29  ;;  %p1023_p5 = scmp.lt.s32.totalorder %s154_s25, %s154_s25 }
  0x12   : > { %p1238_p11 = pnand %p920_p9, %p1405_p1  ;;  %p1024_p7 = scmp.lt.s32.totalorder %s1015_s29, %s1015_s29 }
  0x14   : > { %p1006_p12 = pneg %p1238_p11  ;;  %p1025_p10 = por %p1024_p7, %p1023_p5 }
  0x16   : > { %p1018_p0 = pnand %p1016_p13, %p1006_p12 }
  0x18   : > { %p1019_p3 = pneg %p1018_p0 }
  0x1a   : > { %p1026_p9 = pnand %p1025_p10, %p1019_p3 }
  0x1c   : > { %1029 = shalt.err (!%p1026_p9)
}
  0x1d   : > { %s1156_s30 = smov 64   ;;  %s1157_s5 = smov 4  }
  0x1e   : > { %923 = dma.hbm_to_vmem [thread:$0]  (!%p1238_p11), %s1401_s1, 2048, %s154_s25, [#allocation6], %s1156_s30, %s1156_s30, %s1157_s5  }
  0x1f   : > { %s1041_s8 = scalar_lea.vmem %s167_s28, 2048  ;;  %p1049_p2 = scmp.lt.s32.totalorder %s167_s28, %s167_s28 }
  0x20   : > { %p1042_p1 = scmp.ne.s32.totalorder %s167_s28, %s1041_s8  ;;  %p1050_p6 = scmp.lt.s32.totalorder %s1041_s8, %s1041_s8 }
  0x22   : > { %p1044_p13 = pnand %p1042_p1, %p1006_p12  ;;  %p1051_p5 = por %p1050_p6, %p1049_p2 }
  0x24   : > { %p1045_p0 = pneg %p1044_p13 }
  0x26   : > { %p1052_p10 = pnand %p1051_p5, %p1045_p0 }
  0x28   : > { %1055 = shalt.err (!%p1052_p10)
}
  0x29   : > { %s1158_s9 = smov 128   ;;  %s1159_s10 = smov 8  }
  0x2a   : > { %926 = dma.hbm_to_vmem [thread:$0]  (!%p1238_p11), %s1402_s2, 2048, %s167_s28, [#allocation6], %s1158_s9, %s1158_s9, %s1159_s10  }
  0x2b   : > { %s1264_s13 = sadd.s32 1, %s1152_s18   ;;  %s28_s20 = sadd.s32 1, %s1148_s17 }
  0x2c   : > { %s25_s14 = ssub.s32 %s1152_s18, %s1264_s13  ;;  %p35_p2 = scmp.ne.s32.totalorder %s1148_s17, %s1144_s16 }
  0x2d   : > { %p26_p1 = scmp.eq.s32.totalorder %s25_s14, 0  ;;  %p36_p6 = scmp.eq.s32.totalorder %s1152_s18, 0 }
  0x2e   : > { %p1413_p3 = scmp.eq.s32.totalorder %s1210_s19, 1  ;;  %p937_p9 = scmp.lt.s32.totalorder %s1152_s18, 2 }
  0x2f   : > { %s1273_s24 = scalar_select %p26_p1, %s1148_s17, %s28_s20  }
  0x30   : > { %p37_p12 = por %p36_p6, %p35_p2  ;;  %p1277_p7 = por %p1413_p3, %p35_p2 }
  0x31   : > { %s183_s26 = sand.u32 1, %s1148_s17   ;;  %s778_s28 = sshll.u32 %s1152_s18, 8 }
  0x32   : > { %s1414_s25 = scalar_select %p1277_p7, 1, 0 }
  0x33   : > { %s742_s27 = sshll.u32 %s183_s26, 4  ;;  %s1287_s5 = scalar_lea.hbm %s1400_s0, %s778_s28 }
  0x34   : > { %s187_s6 = scalar_lea.vmem [#allocation2], %s742_s27  ;;  %p1291_p11 = pnand %p937_p9, %p37_p12 }
  0x35   : > { %s195_s7 = sshll.u32 %s187_s6, 4  ;;  %s1295_s11 = scalar_lea.sflag [#allocation3], %s183_s26  ;;  %s1289_s7 = int_to_ptr.vmem [resolvable:$true] %s195_s7 }
  0x36   : > { %s1056_s12 = scalar_lea.hbm %s1287_s5, 256  ;;  %p1058_p0 = pneg %p1291_p11 }
  0x37   : > { %p1057_p13 = scmp.ne.s32.totalorder %s1287_s5, %s1056_s12  ;;  %s1061_s27 = scalar_lea.hbm %s1400_s0, 512 }
  0x38   : > { %p1062_p1 = scmp.lt.s32.totalorder %s1287_s5, %s1400_s0  ;;  %p1063_p2 = scmp.lt.s32.totalorder %s1061_s27, %s1056_s12 }
  0x39   : > { %p1059_p5 = pnand %p1058_p0, %p1057_p13 }
  0x3a   : > { %p1064_p6 = por %p1063_p2, %p1062_p1 }
  0x3b   : > { %p1060_p10 = pneg %p1059_p5 }
  0x3d   : > { %p1065_p12 = pnand %p1064_p6, %p1060_p10 }
  0x3f   : > { %1068 = shalt.err (!%p1065_p12)
}
  0x40   : > { %s1069_s26 = scalar_lea.vmem %s1289_s7, 256  ;;  %s1160_s30 = smov [#allocation2]  }
  0x41   : > { %p1070_p3 = scmp.ne.s32.totalorder %s1289_s7, %s1069_s26  ;;  %s1074_s6 = sshll.u32 %s1160_s30, 4  ;;  %s1075_s6 = int_to_ptr.vmem [resolvable:$false] %s1074_s6 }
  0x42   : > { %s1076_s14 = scalar_lea.vmem %s1075_s6, 512  ;;  %p1077_p5 = scmp.lt.s32.totalorder %s1289_s7, %s1075_s6 }
  0x43   : > { %p1072_p9 = pnand %p1070_p3, %p1058_p0  ;;  %p1078_p7 = scmp.lt.s32.totalorder %s1076_s14, %s1069_s26 }
  0x45   : > { %p1073_p13 = pneg %p1072_p9  ;;  %p1079_p4 = por %p1078_p7, %p1077_p5 }
  0x47   : > { %p1080_p8 = pnand %p1079_p4, %p1073_p13 }
  0x49   : > { %1083 = shalt.err (!%p1080_p8)
}
  0x4a   : > { %930 = dma.hbm_to_vmem [thread:$0]  (!%p1291_p11), %s1287_s5, 256, %s1289_s7, %s1295_s11, %s1158_s9, %s1158_s9, %s1159_s10  }
  0x4b   : > { %p1416_p0 = scmp.ne.s32.totalorder %s1411_s23, 0 }
  0x4c   : > { %s1322_s12 = sand.u32 (!%p1416_p0), 1, %s1144_s16   ;;  %p1417_p4 = scmp.ne.s32.totalorder (!%p1416_p0), %s1409_s21, 0 }
  0x4d   : > { %207 = sbr.rel (%p1416_p0) target bundleno = 557 (0x22d), region = 36  ;;  %s747_s20 = sshll.u32 (!%p1416_p0), %s1322_s12, 4 }
  0x4e   : > { %s210_s27 = scalar_lea.sflag (!%p1416_p0), [#allocation3], %s1322_s12  ;;  %s1328_s8 = scalar_lea.vmem (!%p1416_p0), [#allocation2], %s747_s20 }
  0x52   : > { %1127 = dma.done.wait (%p1417_p4), %s210_s27, 256  }
  0x53   : > { %1129 = vsyncadd (%p1417_p4), %s210_s27, 4294967040  ;;  %p1418_p8 = scmp.eq.s32.totalorder %s1210_s19, 0 }
  0x55   : > { %1131 = dma.done.wait (%p1418_p8), [#allocation6], 4096   ;;  %p1419_p7 = pmov %p1418_p8 }
  0x56   : > { %v981_v0 = vld [vmem:[#allocation5 + $0x78] sm:$0xff]   ;;  %v983_v2 = vld [vmem:[#allocation5 + $0x70] sm:$0xff]   ;;  %v985_v4 = vld [vmem:[#allocation5 + $0x68] sm:$0xff]   ;;  %s779_s11 = sshll.u32 %s1210_s19, 8  ;;  %s245_s28 = scalar_lea.vmem [#allocation8], %s747_s20 }
  0x57   : > { %1133 = vsyncadd (%p1419_p7), [#allocation6], 4294963200  ;;  %v982_v1 = vld [vmem:[#allocation5 + $0x38] sm:$0xff]   ;;  %780 = vmatprep.subr.bf16.mxu0 %v981_v0  ;;  %v984_v3 = vld [vmem:[#allocation5 + $0x30] sm:$0xff]   ;;  %s645_s29 = sshll.u32 %s245_s28, 4  ;;  %s1355_s6 = scalar_lea.hbm %s1404_s4, %s779_s11  ;;  %s1357_s29 = int_to_ptr.vmem [resolvable:$true] %s645_s29 }
  0x58   : > { %781 = vmatpush3.bf16.msra.mxu0 %v982_v1  ;;  %v986_v5 = vld [vmem:[#allocation5 + $0x28] sm:$0xff]   ;;  %v987_v6 = vld [vmem:[#allocation5 + $0x60] sm:$0xff]   ;;  %v989_v8 = vld [vmem:[#allocation5 + $0x58] sm:$0xff]   ;;  %s632_s14 = scalar_lea.sflag [#allocation4], %s1322_s12  ;;  %s1084_s19 = scalar_lea.vmem %s1357_s29, 256 }
  0x59   : > { %782 = vmatprep.subr.bf16.mxu0 %v983_v2  ;;  %v988_v7 = vld [vmem:[#allocation5 + $0x20] sm:$0xff]   ;;  %v990_v9 = vld [vmem:[#allocation5 + $0x18] sm:$0xff]   ;;  %v991_v10 = vld [vmem:[#allocation5 + $0x50] sm:$0xff]   ;;  %p1085_p11 = scmp.ne.s32.totalorder %s1357_s29, %s1084_s19  ;;  %p1420_p10 = scmp.ne.s32.totalorder %s1414_s25, 0 }
  0x5a   : > { %v999_v11 = vld [vmem:[%s1328_s8 + $0x4] ss:$8 sps:$4 sm:$0xff]   ;;  %v997_v24 = vld [vmem:[%s1328_s8] ss:$8 sps:$4 sm:$0xff]   ;;  %s1161_s20 = smov [#allocation8]  }
  0x5b   : > { %v450_v12 = vld [vmem:[#allocation7 + $0x78] sm:$0xff]  ;;  %v449_v13 = vld [vmem:[#allocation7 + $0x70] sm:$0xff]  ;;  %426 = vmatprep.mubr.bf16.mxu0 %v999_v11  ;;  %v993_v15 = vld [vmem:[#allocation5 + $0x48] sm:$0xff]   ;;  %p1086_p1 = pnand %p1085_p11, %p1420_p10  ;;  %s1088_s27 = sshll.u32 %s1161_s20, 4  ;;  %s1089_s27 = int_to_ptr.vmem [resolvable:$false] %s1088_s27 }
  0x5c   : > { %783 = vmatpush3.bf16.msra.mxu0 %v984_v3  ;;  %838 = vmatprep.subr.mxu1 %v450_v12  ;;  %v992_v14 = vld [vmem:[#allocation5 + $0x10] sm:$0xff]   ;;  %v448_v16 = vld [vmem:[#allocation7 + $0x68] sm:$0xff]  ;;  %v447_v17 = vld [vmem:[#allocation7 + $0x60] sm:$0xff]  ;;  %s1090_s8 = scalar_lea.vmem %s1089_s27, 512  ;;  %p1091_p6 = scmp.lt.s32.totalorder %s1357_s29, %s1089_s27 }
  0x5d   : > { %784 = vmatprep.subr.bf16.mxu0 %v985_v4  ;;  %839 = vmatpush3.msra.mxu1 %v450_v12  ;;  %v994_v18 = vld [vmem:[#allocation5 + $0x8] sm:$0xff]   ;;  %v995_v19 = vld [vmem:[#allocation5 + $0x40] sm:$0xff]   ;;  %v446_v20 = vld [vmem:[#allocation7 + $0x58] sm:$0xff]  ;;  %p1087_p2 = pneg %p1086_p1  ;;  %p1092_p12 = scmp.lt.s32.totalorder %s1090_s8, %s1084_s19 }
  0x5e   : > { %840 = vmatprep.subr.mxu1 %v449_v13  ;;  %v445_v21 = vld [vmem:[#allocation7 + $0x50] sm:$0xff]  ;;  %v996_v22 = vld [vmem:[#allocation5] sm:$0xff]   ;;  %v444_v23 = vld [vmem:[#allocation7 + $0x48] sm:$0xff] }
  0x5f   : > { %841 = vmatpush3.msra.mxu1 %v449_v13  ;;  %v443_v25 = vld [vmem:[#allocation7 + $0x40] sm:$0xff]  ;;  %v442_v26 = vld [vmem:[#allocation7 + $0x38] sm:$0xff]  ;;  %v441_v27 = vld [vmem:[#allocation7 + $0x30] sm:$0xff]  ;;  %p1093_p3 = por %p1092_p12, %p1091_p6 }
  0x60   : > { %785 = vmatpush3.bf16.msra.mxu0 %v986_v5  ;;  %842 = vmatprep.subr.mxu1 %v448_v16  ;;  %v440_v28 = vld [vmem:[#allocation7 + $0x28] sm:$0xff]  ;;  %v439_v29 = vld [vmem:[#allocation7 + $0x20] sm:$0xff]  ;;  %v438_v30 = vld [vmem:[#allocation7 + $0x18] sm:$0xff] }
  0x61   : > { %786 = vmatprep.subr.bf16.mxu0 %v987_v6  ;;  %843 = vmatpush3.msra.mxu1 %v448_v16  ;;  %v437_v31 = vld [vmem:[#allocation7 + $0x10] sm:$0xff]  ;;  %v436_v32 = vld [vmem:[#allocation7 + $0x8] sm:$0xff]  ;;  %v435_v33 = vld [vmem:[#allocation7] sm:$0xff]  ;;  %p1094_p9 = pnand %p1093_p3, %p1087_p2 }
  0x62   : > { %844 = vmatprep.subr.mxu1 %v447_v17  ;;  %v751_v35 = vld [vmem:[%s1403_s3] ss:$0 sm:$0xff]  ;;  %v770_v57 = vld [vmem:[%s1403_s3 + $0x1] ss:$0 sm:$0xff]  ;;  %v771_v61 = vld [vmem:[%s1403_s3 + $0x2] ss:$0 sm:$0xff] }
  0x63   : > { %845 = vmatpush3.msra.mxu1 %v447_v17 }
  0x64   : > { %787 = vmatpush3.bf16.msra.mxu0 %v988_v7  ;;  %846 = vmatprep.subr.mxu1 %v446_v20 }
  0x65   : > { %788 = vmatprep.subr.bf16.mxu0 %v989_v8  ;;  %847 = vmatpush3.msra.mxu1 %v446_v20 }
  0x66   : > { %848 = vmatprep.subr.mxu1 %v445_v21 }
  0x67   : > { %849 = vmatpush3.msra.mxu1 %v445_v21 }
  0x68   : > { %789 = vmatpush3.bf16.msra.mxu0 %v990_v9  ;;  %850 = vmatprep.subr.mxu1 %v444_v23 }
  0x69   : > { %790 = vmatprep.subr.bf16.mxu0 %v991_v10  ;;  %851 = vmatpush3.msra.mxu1 %v444_v23 }
  0x6a   : > { %852 = vmatprep.subr.mxu1 %v443_v25 }
  0x6b   : > { %853 = vmatpush3.msra.mxu1 %v443_v25 }
  0x6c   : > { %791 = vmatpush3.bf16.msra.mxu0 %v992_v14  ;;  %854 = vmatprep.subr.mxu1 %v442_v26 }
  0x6d   : > { %792 = vmatprep.subr.bf16.mxu0 %v993_v15  ;;  %855 = vmatpush3.msra.mxu1 %v442_v26 }
  0x6e   : > { %856 = vmatprep.subr.mxu1 %v441_v27 }
  0x6f   : > { %857 = vmatpush3.msra.mxu1 %v441_v27 }
  0x70   : > { %793 = vmatpush3.bf16.msra.mxu0 %v994_v18  ;;  %858 = vmatprep.subr.mxu1 %v440_v28 }
  0x71   : > { %794 = vmatprep.subr.bf16.mxu0 %v995_v19  ;;  %859 = vmatpush3.msra.mxu1 %v440_v28 }
  0x72   : > { %860 = vmatprep.subr.mxu1 %v439_v29 }
  0x73   : > { %861 = vmatpush3.msra.mxu1 %v439_v29 }
  0x74   : > { %795 = vmatpush3.bf16.msra.mxu0 %v996_v22  ;;  %862 = vmatprep.subr.mxu1 %v438_v30 }
  0x75   : > { %873 = vmatprep.subr.mxu0 %v450_v12  ;;  %863 = vmatpush3.msra.mxu1 %v438_v30 }
  0x76   : > { %864 = vmatprep.subr.mxu1 %v437_v31 }
  0x77   : > { %427 = vmatmul.mubr.bf16.vlgmr.msra.gmra.mxu0 %v997_v24  ;;  %865 = vmatpush3.msra.mxu1 %v437_v31 }
  0x78   : > { %874 = vmatpush3.msra.mxu0 %v450_v12  ;;  %866 = vmatprep.subr.mxu1 %v436_v32 }
  0x79   : > { %875 = vmatprep.subr.mxu0 %v449_v13  ;;  %867 = vmatpush3.msra.mxu1 %v436_v32 }
  0x7a   : > { %876 = vmatpush3.msra.mxu0 %v449_v13  ;;  %868 = vmatprep.subr.mxu1 %v435_v33 }
  0x7b   : > { %877 = vmatprep.subr.mxu0 %v448_v16  ;;  %869 = vmatpush3.msra.mxu1 %v435_v33 }
  0x7c   : > { %878 = vmatpush3.msra.mxu0 %v448_v16 }
  0x7d   : > { %879 = vmatprep.subr.mxu0 %v447_v17 }
  0x7e   : > { %880 = vmatpush3.msra.mxu0 %v447_v17 }
  0x7f   : > { %881 = vmatprep.subr.mxu0 %v446_v20 }
  0x80   : > { %882 = vmatpush3.msra.mxu0 %v446_v20 }
  0x81   : > { %883 = vmatprep.subr.mxu0 %v445_v21 }
  0x82   : > { %884 = vmatpush3.msra.mxu0 %v445_v21 }
  0x83   : > { %885 = vmatprep.subr.mxu0 %v444_v23 }
  0x84   : > { %886 = vmatpush3.msra.mxu0 %v444_v23 }
  0x85   : > { %887 = vmatprep.subr.mxu0 %v443_v25 }
  0x86   : > { %888 = vmatpush3.msra.mxu0 %v443_v25 }
  0x87   : > { %889 = vmatprep.subr.mxu0 %v442_v26 }
  0x88   : > { %890 = vmatpush3.msra.mxu0 %v442_v26 }
  0x89   : > { %891 = vmatprep.subr.mxu0 %v441_v27 }
  0x8a   : > { %892 = vmatpush3.msra.mxu0 %v441_v27 }
  0x8b   : > { %893 = vmatprep.subr.mxu0 %v440_v28 }
  0x8c   : > { %894 = vmatpush3.msra.mxu0 %v440_v28 }
  0x8d   : > { %895 = vmatprep.subr.mxu0 %v439_v29 }
  0x8e   : > { %896 = vmatpush3.msra.mxu0 %v439_v29 }
  0x8f   : > { %897 = vmatprep.subr.mxu0 %v438_v30 }
  0x90   : > { %898 = vmatpush3.msra.mxu0 %v438_v30 }
  0x91   : > { %899 = vmatprep.subr.mxu0 %v437_v31 }
  0x92   : > { %900 = vmatpush3.msra.mxu0 %v437_v31 }
  0x93   : > { %901 = vmatprep.subr.mxu0 %v436_v32 }
  0x94   : > { %902 = vmatpush3.msra.mxu0 %v436_v32 }
  0x95   : > { %903 = vmatprep.subr.mxu0 %v435_v33 }
  0x96   : > { %904 = vmatpush3.msra.mxu0 %v435_v33 }
 0x137   : > { %v796_v34 = vpop.f32.mrf.mxu0 }
 0x139   : > { %v797_v36 = vpop.f32.mrf.mxu0 }
 0x13a   : > { %v798_v37 = vadd.f32 %v797_v36, %v796_v34 }
 0x13b   : > { %v799_v38 = vpop.f32.mrf.mxu0 }
 0x13c   : > { %v429_v39 = vadd.f32 %v798_v37, %v751_v35 }
 0x13d   : > { %v800_v40 = vpop.f32.mrf.mxu0 }
 0x13e   : > { %v801_v41 = vadd.f32 %v800_v40, %v799_v38  ;;  %870 = vmatprep.mubr.f32.mxu1 %v429_v39  ;;  %v526_v42 = vmul.f32 %v429_v39, %v429_v39 }
 0x140   : > { %v432_v43 = vadd.f32 %v801_v41, %v751_v35  ;;  %905 = vmatprep.mubr.f32.mxu0 %v526_v42 }
 0x142   : > { %v527_v44 = vmul.f32 %v432_v43, %v432_v43  ;;  %871 = vmatmul.mubr.f32.vlgmr.msra.gmra.mxu1 %v432_v43 }
 0x144   : > { %906 = vmatmul.mubr.f32.vlgmr.msra.gmra.mxu0 %v527_v44 }
 0x202   : > { %v872_v45 = vpop.f32.mrf.mxu1 }
 0x203   : > { %v604_v46 = vmul.f32 %v872_v45, %v872_v45  ;;  %v608_v55 = vsub.f32 %v432_v43, %v872_v45 }
 0x204   : > { %v517_v47 = vpop.f32.mrf.mxu1  ;;  %v907_v48 = vpop.f32.mrf.mxu0 }
 0x205   : > { %v603_v49 = vmul.f32 %v517_v47, %v517_v47  ;;  %v606_v50 = vsub.f32 %v907_v48, %v604_v46  ;;  %v607_v58 = vsub.f32 %v429_v39, %v517_v47 }
 0x206   : > { %v594_v51 = vpop.f32.mrf.mxu0 }
 0x207   : > { %v610_v52 = vadd.f32 1e-05, %v606_v50  ;;  %v605_v53 = vsub.f32 %v594_v51, %v603_v49 }
 0x209   : > { %1000 = vrsqrt.f32 %v610_v52  ;;  %v609_v54 = vadd.f32 1e-05, %v605_v53 }
 0x20b   : > { %1002 = vrsqrt.f32 %v609_v54 }
 0x216   : > { %v1001_v56 = vpop.eup %1000 }
 0x217   : > { %v614_v59 = vmul.f32 %v1001_v56, %v608_v55 }
 0x218   : > { %v1003_v60 = vpop.eup %1002 }
 0x219   : > { %v621_v62 = vmul.f32 %v770_v57, %v614_v59  ;;  %v613_v63 = vmul.f32 %v1003_v60, %v607_v58 }
 0x21b   : > { %v628_v0 = vadd.f32 %v771_v61, %v621_v62  ;;  %v620_v1 = vmul.f32 %v770_v57, %v613_v63 }
 0x21d   : > { %v627_v2 = vadd.f32 %v771_v61, %v620_v1  ;;  %630 = vst [vmem:[%s245_s28 + $0x8] sm:$0xff] %v628_v0 }
 0x21f   : > { %629 = vst [vmem:[%s245_s28] sm:$0xff] %v627_v2 }
 0x220   : > { %1097 = shalt.err (!%p1094_p9)
}
 0x221   : > { %s1098_s21 = scalar_lea.hbm %s1355_s6, 256  ;;  %s1102_s10 = scalar_lea.hbm %s1404_s4, 512 }
 0x222   : > { %p1099_p13 = scmp.ne.s32.totalorder %s1355_s6, %s1098_s21  ;;  %p1103_p4 = scmp.lt.s32.totalorder %s1355_s6, %s1404_s4 }
 0x223   : > { %p1104_p8 = scmp.lt.s32.totalorder %s1102_s10, %s1098_s21 }
 0x224   : > { %p1100_p5 = pnand %p1099_p13, %p1420_p10 }
 0x225   : > { %p1105_p7 = por %p1104_p8, %p1103_p4 }
 0x226   : > { %p1101_p0 = pneg %p1100_p5 }
 0x228   : > { %p1106_p11 = pnand %p1105_p7, %p1101_p0 }
 0x22a   : > { %1109 = shalt.err (!%p1106_p11)
}
 0x22b   : > { %s1162_s11 = smov 128   ;;  %s1163_s28 = smov 8  }
 0x22c   : > { %918 = dma.vmem_to_hbm [thread:$0]  (%p1420_p10), %s1357_s29, 256, %s1355_s6, %s632_s14, %s1162_s11, %s1162_s11, %s1163_s28  }
 0x22d PF: > { %s660_s26 = sand.u32 1, %s1140_s15   ;;  %p1421_p1 = scmp.ne.s32.totalorder %s1410_s22, 0 }
 0x22e   : > { %p1422_p2 = scmp.ge.s32.totalorder %s1152_s18, 2  ;;  %s661_s30 = scalar_lea.sflag [#allocation4], %s660_s26 }
 0x230   : > { %p932_p6 = pnand %p1422_p2, %p1421_p1 }
 0x232   : > { %p933_p12 = pneg %p932_p6 }
 0x234   : > { %1135 = dma.done.wait (%p933_p12), %s661_s30, 256  }
 0x235   : > { %1137 = vsyncadd (%p933_p12), %s661_s30, 4294967040  ;;  %p18_p3 = scmp.ge.s32.totalorder %s1264_s13, 4   ;;  %s1423_s15 = smov %s1144_s16 }
 0x236   : > { %s1424_s16 = smov %s1148_s17  ;;  %s1425_s17 = smov %s1273_s24 }
 0x237   : > { %s1426_s18 = smov %s1264_s13  ;;  %20 = sbr.rel (!%p18_p3) target bundleno = 6 (0x6), region = 89 }
 0x23c   :  { %666 = vsyncpa [#allocation3], 1 }
 0x23d   :  { %668 = vsyncpa [#allocation3 + $0x1], 1 }
 0x23e   :  { %669 = vsyncpa [#allocation6], 1 }
 0x23f   :  { %670 = vsyncpa [#allocation4], 1 }
 0x240   :  { %672 = vsyncpa [#allocation4 + $0x1], 1 }

</bundles_post_ra>
